<compile_context>
chip_gen: v7x
topology: tpu7x:2x2x1
jax: 0.10.0
libtpu: 0.0.40
codegen_flags: <defaults>
</compile_context>

<pallas_src>
import functools
import math

import jax
import jax.numpy as jnp
import numpy as np
from jax.experimental import pallas as pl
from jax.experimental.pallas import tpu as pltpu


LAYERS = [6, 128, 256, 512, 256, 64, 1]  # in_dim, hidden..., out_dim


def _round_up(n, m):
    return ((n + m - 1) // m) * m


def _choose_tile(batch, tile_batch):
    """Pick a batch tile: multiple of 8, capped at tile_batch, >=2 (even) grid steps if possible."""
    base = _round_up(max(batch, 8), 8)
    cap = max(8, _round_up(min(tile_batch, base), 8))
    if base <= 8:
        return 8
    # Even number of grid steps >= 2 so v7x megacore shards the batch axis across both TCs.
    n_steps = max(2, 2 * math.ceil(math.ceil(base / cap) / 2))
    return _round_up(math.ceil(base / n_steps), 8)


def _mlp_kernel(x_ref, *refs, n_layers, reduce_last, vpu_first, f32_matmul):
    """Fused MLP forward on one batch tile.

    refs = (w0, b0, w1, b1, ..., w_{L-1}, b_{L-1}, o_ref)
    Weights/biases are VMEM-resident across grid steps; x/out are pipelined per tile.
    If reduce_last, the final weight is a (1, K) row and the last layer is a lane reduction.
    """
    o_ref = refs[-1]
    wb = refs[:-1]

    h = x_ref[...]  # (TB, in_dim) f32
    for i in range(n_layers):
        w = wb[2 * i][...]
        b = wb[2 * i + 1][...]  # (1, out_features) f32 — broadcasts over the batch tile
        is_last = i == n_layers - 1

        if is_last and reduce_last:
            # Final K -> 1 layer: elementwise mul + cross-lane reduce (VPU/XLU), no MXU.
            h = jnp.sum(h * w, axis=-1, keepdims=True) + b
        elif i == 0 and vpu_first:
            # Tiny contraction (K = in_dim < 8): unrolled broadcast FMAs on the VPU.
            acc = jnp.broadcast_to(b, (h.shape[0], w.shape[1])).astype(jnp.float32)
            for k in range(w.shape[0]):
                acc = acc + h[:, k:k + 1] * w[k:k + 1, :]
            h = acc
        else:
            if f32_matmul:
                # True f32 path: explicit HIGHEST precision (multi-pass MXU), f32 accumulation.
                h = jnp.dot(h, w, preferred_element_type=jnp.float32,
                            precision=jax.lax.Precision.HIGHEST) + b
            else:
                # bf16 MXU inputs (weights pre-cast on host), f32 accumulation; bias/ReLU in f32.
                h = jnp.dot(h.astype(w.dtype), w,
                            preferred_element_type=jnp.float32) + b

        if not is_last:
            h = jnp.maximum(h, 0.0)

    o_ref[...] = h.astype(o_ref.dtype)


def mlp_forward(x, params, *, tile_batch=2048, matmul_dtype=jnp.bfloat16,
                vmem_limit_bytes=32 * 1024 * 1024):
    """params: list of (w, b) with w:(in, out), b:(1, out). Returns (batch, out_dim) f32."""
    batch, in_dim = x.shape
    out_dim = params[-1][0].shape[1]
    n_layers = len(params)
    f32_matmul = np.dtype(matmul_dtype) == np.dtype(np.float32)

    reduce_last = out_dim == 1
    vpu_first = in_dim < 8

    # --- batch tiling: 8-aligned tile, capped at tile_batch, >=2 even grid steps if possible ---
    tb = _choose_tile(batch, tile_batch)
    padded = _round_up(batch, tb)
    x_p = x.astype(jnp.float32)
    if padded != batch:
        x_p = jnp.pad(x_p, ((0, padded - batch), (0, 0)))
    grid = (padded // tb,)

    # --- flatten params; HOST-side dtype handling -----------------------------------------
    #   * MXU-layer weights pre-cast to matmul_dtype (bf16 by default): no per-step re-cast,
    #     half the resident param VMEM.
    #   * First-layer (VPU FMA) and last-layer (lane-reduce, reshaped to (1, K)) weights stay f32.
    #   * Biases stay f32 (bias-add / ReLU in f32).
    flat = []
    for i, (w, b) in enumerate(params):
        b = b.astype(jnp.float32)
        is_last = i == n_layers - 1
        if is_last and reduce_last:
            w = w.astype(jnp.float32).reshape(1, w.shape[0])
        elif i == 0 and vpu_first:
            w = w.astype(jnp.float32)
        else:
            w = w.astype(matmul_dtype)
        flat.extend([w, b])

    # --- specs ------------------------------------------------------------------------------
    def resident(shape):  # whole array, VMEM-resident across all grid steps (constant index_map)
        return pl.BlockSpec(shape, lambda i: (0, 0))

    in_specs = [pl.BlockSpec((tb, in_dim), lambda i: (i, 0))]
    in_specs += [resident(tuple(a.shape)) for a in flat]
    out_spec = pl.BlockSpec((tb, out_dim), lambda i: (i, 0))

    # --- advisory cost estimate ---------------------------------------------------------------
    flops_per_row = sum(2 * w.size for w, _ in params)
    param_bytes = sum(int(a.size) * a.dtype.itemsize for a in flat)
    cost = pl.CostEstimate(
        flops=flops_per_row * padded,
        transcendentals=0,
        bytes_accessed=padded * (in_dim + out_dim) * 4 + param_bytes,
    )

    kernel = functools.partial(
        _mlp_kernel,
        n_layers=n_layers,
        reduce_last=reduce_last,
        vpu_first=vpu_first,
        f32_matmul=f32_matmul,
    )

    out = pl.pallas_call(
        kernel,
        out_shape=jax.ShapeDtypeStruct((padded, out_dim), jnp.float32),
        grid_spec=pltpu.PrefetchScalarGridSpec(
            num_scalar_prefetch=0,
            grid=grid,
            in_specs=in_specs,
            out_specs=out_spec,
        ),
        compiler_params=pltpu.CompilerParams(
            dimension_semantics=("parallel",),  # 2x on v7x megacore when grid >= 2 steps
            vmem_limit_bytes=vmem_limit_bytes,
        ),
        cost_estimate=cost,
    )(x_p, *flat)

    return out[:batch]


def init_params(key, layers=LAYERS):
    """Deterministic init mimicking torch.nn.Linear default (uniform +/- 1/sqrt(fan_in))."""
    params = []
    for i in range(len(layers) - 1):
        fan_in, fan_out = layers[i], layers[i + 1]
        key, kw, kb = jax.random.split(key, 3)
        bound = 1.0 / (fan_in ** 0.5)
        w = jax.random.uniform(kw, (fan_in, fan_out), jnp.float32, -bound, bound)
        b = jax.random.uniform(kb, (1, fan_out), jnp.float32, -bound, bound)
        params.append((w, b))
    return params


def reference_forward(x, params):
    """Pure-JAX reference with explicit f32-quality matmuls."""
    h = x.astype(jnp.float32)
    for i, (w, b) in enumerate(params):
        h = jnp.dot(h, w, precision=jax.lax.Precision.HIGHEST) + b
        if i < len(params) - 1:
            h = jnp.maximum(h, 0.0)
    return h


if __name__ == "__main__":
    key = jax.random.PRNGKey(0)
    k_x, k_x2, k_p = jax.random.split(key, 3)
    params = init_params(k_p)

    # Case 1: small batch, default bf16-MXU / f32-accumulate path (loose tolerance vs f32 ref).
    batch = 8
    x = jax.random.normal(k_x, (batch, LAYERS[0]), jnp.float32)
    out = jax.block_until_ready(mlp_forward(x, params))
    ref = reference_forward(x, params)
    assert out.shape == (batch, 1), out.shape
    err = float(jnp.max(jnp.abs(out - ref)))
    assert jnp.allclose(out, ref, atol=5e-2, rtol=5e-2), f"bf16 path max abs err {err}"

    # Case 2: batch not a multiple of the tile -> host padding + multi-step pipelined grid with
    # VMEM-resident weights; explicit-HIGHEST f32 path checked against the f32 reference tightly.
    batch2 = 300
    x2 = jax.random.normal(k_x2, (batch2, LAYERS[0]), jnp.float32)
    out2 = jax.block_until_ready(
        mlp_forward(x2, params, tile_batch=128, matmul_dtype=jnp.float32))
    ref2 = reference_forward(x2, params)
    assert out2.shape == (batch2, 1), out2.shape
    err2 = float(jnp.max(jnp.abs(out2 - ref2)))
    assert jnp.allclose(out2, ref2, atol=1e-4, rtol=1e-4), f"f32 path max abs err {err2}"

    # Case 3: bf16 default on the multi-tile batch (exercises >=2 even grid steps for v7x).
    out3 = jax.block_until_ready(mlp_forward(x2, params, tile_batch=128))
    assert out3.shape == (batch2, 1), out3.shape
    err3 = float(jnp.max(jnp.abs(out3 - ref2)))
    assert jnp.allclose(out3, ref2, atol=5e-2, rtol=5e-2), f"bf16 path max abs err {err3}"

    print("KERNEL_OK")
</pallas_src>

<mosaic_0001>
module attributes {stable_mosaic.version = 11 : i64} {
  func.func @_mlp_kernel(%arg0: i32, %arg1: memref<8x6xf32, #tpu.memory_space<vmem>>, %arg2: memref<6x128xf32, #tpu.memory_space<vmem>>, %arg3: memref<1x128xf32, #tpu.memory_space<vmem>>, %arg4: memref<128x256xbf16, #tpu.memory_space<vmem>>, %arg5: memref<1x256xf32, #tpu.memory_space<vmem>>, %arg6: memref<256x512xbf16, #tpu.memory_space<vmem>>, %arg7: memref<1x512xf32, #tpu.memory_space<vmem>>, %arg8: memref<512x256xbf16, #tpu.memory_space<vmem>>, %arg9: memref<1x256xf32, #tpu.memory_space<vmem>>, %arg10: memref<256x64xbf16, #tpu.memory_space<vmem>>, %arg11: memref<1x64xf32, #tpu.memory_space<vmem>>, %arg12: memref<1x64xf32, #tpu.memory_space<vmem>>, %arg13: memref<1x1xf32, #tpu.memory_space<vmem>>, %arg14: memref<8x1xf32, #tpu.memory_space<vmem>>) attributes {dimension_semantics = [#tpu.dimension_semantics<parallel>], iteration_bounds = array<i64: 1>, scalar_prefetch = 0 : i64, scratch_operands = 0 : i64, tpu.core_type = #tpu.core_type<tc>, window_params = [{transform_indices = @transform_0, window_bounds = array<i64: 8, 6>}, {pipeline_mode = #tpu.pipeline_mode<synchronous>, transform_indices = @transform_1, window_bounds = array<i64: 6, 128>}, {pipeline_mode = #tpu.pipeline_mode<synchronous>, transform_indices = @transform_2, window_bounds = array<i64: 1, 128>}, {pipeline_mode = #tpu.pipeline_mode<synchronous>, transform_indices = @transform_3, window_bounds = array<i64: 128, 256>}, {pipeline_mode = #tpu.pipeline_mode<synchronous>, transform_indices = @transform_4, window_bounds = array<i64: 1, 256>}, {pipeline_mode = #tpu.pipeline_mode<synchronous>, transform_indices = @transform_5, window_bounds = array<i64: 256, 512>}, {pipeline_mode = #tpu.pipeline_mode<synchronous>, transform_indices = @transform_6, window_bounds = array<i64: 1, 512>}, {pipeline_mode = #tpu.pipeline_mode<synchronous>, transform_indices = @transform_7, window_bounds = array<i64: 512, 256>}, {pipeline_mode = #tpu.pipeline_mode<synchronous>, transform_indices = @transform_8, window_bounds = array<i64: 1, 256>}, {pipeline_mode = #tpu.pipeline_mode<synchronous>, transform_indices = @transform_9, window_bounds = array<i64: 256, 64>}, {pipeline_mode = #tpu.pipeline_mode<synchronous>, transform_indices = @transform_10, window_bounds = array<i64: 1, 64>}, {pipeline_mode = #tpu.pipeline_mode<synchronous>, transform_indices = @transform_11, window_bounds = array<i64: 1, 64>}, {pipeline_mode = #tpu.pipeline_mode<synchronous>, transform_indices = @transform_12, window_bounds = array<i64: 1, 1>}, {transform_indices = @transform_13, window_bounds = array<i64: 8, 1>}]} {
    %c0 = arith.constant 0 : index
    %c0_0 = arith.constant 0 : index
    %0 = vector.load %arg1[%c0, %c0_0] : memref<8x6xf32, #tpu.memory_space<vmem>>, vector<8x6xf32>
    %c0_1 = arith.constant 0 : index
    %c0_2 = arith.constant 0 : index
    %1 = vector.load %arg2[%c0_1, %c0_2] : memref<6x128xf32, #tpu.memory_space<vmem>>, vector<6x128xf32>
    %c0_3 = arith.constant 0 : index
    %c0_4 = arith.constant 0 : index
    %2 = vector.load %arg3[%c0_3, %c0_4] : memref<1x128xf32, #tpu.memory_space<vmem>>, vector<1x128xf32>
    %3 = vector.shape_cast %2 : vector<1x128xf32> to vector<1x128xf32>
    %4 = vector.broadcast %3 : vector<1x128xf32> to vector<8x128xf32>
    %5 = vector.extract_strided_slice %0 {offsets = [0, 0], sizes = [8, 1], strides = [1, 1]} : vector<8x6xf32> to vector<8x1xf32>
    %6 = vector.extract_strided_slice %1 {offsets = [0, 0], sizes = [1, 128], strides = [1, 1]} : vector<6x128xf32> to vector<1x128xf32>
    %7 = vector.broadcast %5 : vector<8x1xf32> to vector<8x128xf32>
    %8 = vector.broadcast %6 : vector<1x128xf32> to vector<8x128xf32>
    %9 = arith.mulf %7, %8 : vector<8x128xf32>
    %10 = arith.addf %4, %9 : vector<8x128xf32>
    %11 = vector.extract_strided_slice %0 {offsets = [0, 1], sizes = [8, 1], strides = [1, 1]} : vector<8x6xf32> to vector<8x1xf32>
    %12 = vector.extract_strided_slice %1 {offsets = [1, 0], sizes = [1, 128], strides = [1, 1]} : vector<6x128xf32> to vector<1x128xf32>
    %13 = vector.broadcast %11 : vector<8x1xf32> to vector<8x128xf32>
    %14 = vector.broadcast %12 : vector<1x128xf32> to vector<8x128xf32>
    %15 = arith.mulf %13, %14 : vector<8x128xf32>
    %16 = arith.addf %10, %15 : vector<8x128xf32>
    %17 = vector.extract_strided_slice %0 {offsets = [0, 2], sizes = [8, 1], strides = [1, 1]} : vector<8x6xf32> to vector<8x1xf32>
    %18 = vector.extract_strided_slice %1 {offsets = [2, 0], sizes = [1, 128], strides = [1, 1]} : vector<6x128xf32> to vector<1x128xf32>
    %19 = vector.broadcast %17 : vector<8x1xf32> to vector<8x128xf32>
    %20 = vector.broadcast %18 : vector<1x128xf32> to vector<8x128xf32>
    %21 = arith.mulf %19, %20 : vector<8x128xf32>
    %22 = arith.addf %16, %21 : vector<8x128xf32>
    %23 = vector.extract_strided_slice %0 {offsets = [0, 3], sizes = [8, 1], strides = [1, 1]} : vector<8x6xf32> to vector<8x1xf32>
    %24 = vector.extract_strided_slice %1 {offsets = [3, 0], sizes = [1, 128], strides = [1, 1]} : vector<6x128xf32> to vector<1x128xf32>
    %25 = vector.broadcast %23 : vector<8x1xf32> to vector<8x128xf32>
    %26 = vector.broadcast %24 : vector<1x128xf32> to vector<8x128xf32>
    %27 = arith.mulf %25, %26 : vector<8x128xf32>
    %28 = arith.addf %22, %27 : vector<8x128xf32>
    %29 = vector.extract_strided_slice %0 {offsets = [0, 4], sizes = [8, 1], strides = [1, 1]} : vector<8x6xf32> to vector<8x1xf32>
    %30 = vector.extract_strided_slice %1 {offsets = [4, 0], sizes = [1, 128], strides = [1, 1]} : vector<6x128xf32> to vector<1x128xf32>
    %31 = vector.broadcast %29 : vector<8x1xf32> to vector<8x128xf32>
    %32 = vector.broadcast %30 : vector<1x128xf32> to vector<8x128xf32>
    %33 = arith.mulf %31, %32 : vector<8x128xf32>
    %34 = arith.addf %28, %33 : vector<8x128xf32>
    %35 = vector.extract_strided_slice %0 {offsets = [0, 5], sizes = [8, 1], strides = [1, 1]} : vector<8x6xf32> to vector<8x1xf32>
    %36 = vector.extract_strided_slice %1 {offsets = [5, 0], sizes = [1, 128], strides = [1, 1]} : vector<6x128xf32> to vector<1x128xf32>
    %37 = vector.broadcast %35 : vector<8x1xf32> to vector<8x128xf32>
    %38 = vector.broadcast %36 : vector<1x128xf32> to vector<8x128xf32>
    %39 = arith.mulf %37, %38 : vector<8x128xf32>
    %40 = arith.addf %34, %39 : vector<8x128xf32>
    %cst = arith.constant 0.000000e+00 : f32
    %41 = vector.broadcast %cst : f32 to vector<8x128xf32>
    %42 = arith.maximumf %40, %41 : vector<8x128xf32>
    %c0_5 = arith.constant 0 : index
    %c0_6 = arith.constant 0 : index
    %43 = vector.load %arg4[%c0_5, %c0_6] : memref<128x256xbf16, #tpu.memory_space<vmem>>, vector<128x256xbf16>
    %c0_7 = arith.constant 0 : index
    %c0_8 = arith.constant 0 : index
    %44 = vector.load %arg5[%c0_7, %c0_8] : memref<1x256xf32, #tpu.memory_space<vmem>>, vector<1x256xf32>
    %45 = arith.truncf %42 : vector<8x128xf32> to vector<8x128xbf16>
    %cst_9 = arith.constant dense<0.000000e+00> : vector<8x256xf32>
    %46 = tpu.matmul %45, %43, %cst_9 {dimension_numbers = #tpu.dot_dimension_numbers<[1], [0], [0], [1], [0, 0, 1, 1], [], []>} : vector<8x128xbf16>, vector<128x256xbf16>, vector<8x256xf32> -> vector<8x256xf32>
    %47 = vector.broadcast %44 : vector<1x256xf32> to vector<8x256xf32>
    %48 = arith.addf %46, %47 : vector<8x256xf32>
    %cst_10 = arith.constant 0.000000e+00 : f32
    %49 = vector.broadcast %cst_10 : f32 to vector<8x256xf32>
    %50 = arith.maximumf %48, %49 : vector<8x256xf32>
    %c0_11 = arith.constant 0 : index
    %c0_12 = arith.constant 0 : index
    %51 = vector.load %arg6[%c0_11, %c0_12] : memref<256x512xbf16, #tpu.memory_space<vmem>>, vector<256x512xbf16>
    %c0_13 = arith.constant 0 : index
    %c0_14 = arith.constant 0 : index
    %52 = vector.load %arg7[%c0_13, %c0_14] : memref<1x512xf32, #tpu.memory_space<vmem>>, vector<1x512xf32>
    %53 = arith.truncf %50 : vector<8x256xf32> to vector<8x256xbf16>
    %cst_15 = arith.constant dense<0.000000e+00> : vector<8x512xf32>
    %54 = tpu.matmul %53, %51, %cst_15 {dimension_numbers = #tpu.dot_dimension_numbers<[1], [0], [0], [1], [0, 0, 1, 1], [], []>} : vector<8x256xbf16>, vector<256x512xbf16>, vector<8x512xf32> -> vector<8x512xf32>
    %55 = vector.broadcast %52 : vector<1x512xf32> to vector<8x512xf32>
    %56 = arith.addf %54, %55 : vector<8x512xf32>
    %cst_16 = arith.constant 0.000000e+00 : f32
    %57 = vector.broadcast %cst_16 : f32 to vector<8x512xf32>
    %58 = arith.maximumf %56, %57 : vector<8x512xf32>
    %c0_17 = arith.constant 0 : index
    %c0_18 = arith.constant 0 : index
    %59 = vector.load %arg8[%c0_17, %c0_18] : memref<512x256xbf16, #tpu.memory_space<vmem>>, vector<512x256xbf16>
    %c0_19 = arith.constant 0 : index
    %c0_20 = arith.constant 0 : index
    %60 = vector.load %arg9[%c0_19, %c0_20] : memref<1x256xf32, #tpu.memory_space<vmem>>, vector<1x256xf32>
    %61 = arith.truncf %58 : vector<8x512xf32> to vector<8x512xbf16>
    %cst_21 = arith.constant dense<0.000000e+00> : vector<8x256xf32>
    %62 = tpu.matmul %61, %59, %cst_21 {dimension_numbers = #tpu.dot_dimension_numbers<[1], [0], [0], [1], [0, 0, 1, 1], [], []>} : vector<8x512xbf16>, vector<512x256xbf16>, vector<8x256xf32> -> vector<8x256xf32>
    %63 = vector.broadcast %60 : vector<1x256xf32> to vector<8x256xf32>
    %64 = arith.addf %62, %63 : vector<8x256xf32>
    %cst_22 = arith.constant 0.000000e+00 : f32
    %65 = vector.broadcast %cst_22 : f32 to vector<8x256xf32>
    %66 = arith.maximumf %64, %65 : vector<8x256xf32>
    %c0_23 = arith.constant 0 : index
    %c0_24 = arith.constant 0 : index
    %67 = vector.load %arg10[%c0_23, %c0_24] : memref<256x64xbf16, #tpu.memory_space<vmem>>, vector<256x64xbf16>
    %c0_25 = arith.constant 0 : index
    %c0_26 = arith.constant 0 : index
    %68 = vector.load %arg11[%c0_25, %c0_26] : memref<1x64xf32, #tpu.memory_space<vmem>>, vector<1x64xf32>
    %69 = arith.truncf %66 : vector<8x256xf32> to vector<8x256xbf16>
    %cst_27 = arith.constant dense<0.000000e+00> : vector<8x64xf32>
    %70 = tpu.matmul %69, %67, %cst_27 {dimension_numbers = #tpu.dot_dimension_numbers<[1], [0], [0], [1], [0, 0, 1, 1], [], []>} : vector<8x256xbf16>, vector<256x64xbf16>, vector<8x64xf32> -> vector<8x64xf32>
    %71 = vector.broadcast %68 : vector<1x64xf32> to vector<8x64xf32>
    %72 = arith.addf %70, %71 : vector<8x64xf32>
    %cst_28 = arith.constant 0.000000e+00 : f32
    %73 = vector.broadcast %cst_28 : f32 to vector<8x64xf32>
    %74 = arith.maximumf %72, %73 : vector<8x64xf32>
    %c0_29 = arith.constant 0 : index
    %c0_30 = arith.constant 0 : index
    %75 = vector.load %arg12[%c0_29, %c0_30] : memref<1x64xf32, #tpu.memory_space<vmem>>, vector<1x64xf32>
    %c0_31 = arith.constant 0 : index
    %c0_32 = arith.constant 0 : index
    %76 = vector.load %arg13[%c0_31, %c0_32] : memref<1x1xf32, #tpu.memory_space<vmem>>, vector<1x1xf32>
    %77 = vector.broadcast %75 : vector<1x64xf32> to vector<8x64xf32>
    %78 = arith.mulf %74, %77 : vector<8x64xf32>
    %cst_33 = arith.constant dense<0.000000e+00> : vector<8xf32>
    %79 = vector.multi_reduction <add>, %78, %cst_33 [1] : vector<8x64xf32> to vector<8xf32>
    %80 = vector.shape_cast %79 : vector<8xf32> to vector<8x1xf32>
    %81 = vector.broadcast %76 : vector<1x1xf32> to vector<8x1xf32>
    %82 = arith.addf %80, %81 : vector<8x1xf32>
    %c0_34 = arith.constant 0 : index
    %c0_35 = arith.constant 0 : index
    %83 = vector.load %arg14[%c0_34, %c0_35] : memref<8x1xf32, #tpu.memory_space<vmem>>, vector<8x1xf32>
    tpu.vector_store %arg14[%c0_34, %c0_35], %82 {strides = array<i32>} : memref<8x1xf32, #tpu.memory_space<vmem>>, vector<8x1xf32>,
    return
  }
  func.func @transform_0(%arg0: i32) -> (i32, i32) {
    %c0_i32 = arith.constant 0 : i32
    %c0_i32_0 = arith.constant 0 : i32
    return %arg0, %c0_i32 : i32, i32
  }
  func.func @transform_1(%arg0: i32) -> (i32, i32) {
    %c0_i32 = arith.constant 0 : i32
    %c0_i32_0 = arith.constant 0 : i32
    %c0_i32_1 = arith.constant 0 : i32
    return %c0_i32, %c0_i32_0 : i32, i32
  }
  func.func @transform_2(%arg0: i32) -> (i32, i32) {
    %c0_i32 = arith.constant 0 : i32
    %c0_i32_0 = arith.constant 0 : i32
    %c0_i32_1 = arith.constant 0 : i32
    return %c0_i32, %c0_i32_0 : i32, i32
  }
  func.func @transform_3(%arg0: i32) -> (i32, i32) {
    %c0_i32 = arith.constant 0 : i32
    %c0_i32_0 = arith.constant 0 : i32
    %c0_i32_1 = arith.constant 0 : i32
    return %c0_i32, %c0_i32_0 : i32, i32
  }
  func.func @transform_4(%arg0: i32) -> (i32, i32) {
    %c0_i32 = arith.constant 0 : i32
    %c0_i32_0 = arith.constant 0 : i32
    %c0_i32_1 = arith.constant 0 : i32
    return %c0_i32, %c0_i32_0 : i32, i32
  }
  func.func @transform_5(%arg0: i32) -> (i32, i32) {
    %c0_i32 = arith.constant 0 : i32
    %c0_i32_0 = arith.constant 0 : i32
    %c0_i32_1 = arith.constant 0 : i32
    return %c0_i32, %c0_i32_0 : i32, i32
  }
  func.func @transform_6(%arg0: i32) -> (i32, i32) {
    %c0_i32 = arith.constant 0 : i32
    %c0_i32_0 = arith.constant 0 : i32
    %c0_i32_1 = arith.constant 0 : i32
    return %c0_i32, %c0_i32_0 : i32, i32
  }
  func.func @transform_7(%arg0: i32) -> (i32, i32) {
    %c0_i32 = arith.constant 0 : i32
    %c0_i32_0 = arith.constant 0 : i32
    %c0_i32_1 = arith.constant 0 : i32
    return %c0_i32, %c0_i32_0 : i32, i32
  }
  func.func @transform_8(%arg0: i32) -> (i32, i32) {
    %c0_i32 = arith.constant 0 : i32
    %c0_i32_0 = arith.constant 0 : i32
    %c0_i32_1 = arith.constant 0 : i32
    return %c0_i32, %c0_i32_0 : i32, i32
  }
  func.func @transform_9(%arg0: i32) -> (i32, i32) {
    %c0_i32 = arith.constant 0 : i32
    %c0_i32_0 = arith.constant 0 : i32
    %c0_i32_1 = arith.constant 0 : i32
    return %c0_i32, %c0_i32_0 : i32, i32
  }
  func.func @transform_10(%arg0: i32) -> (i32, i32) {
    %c0_i32 = arith.constant 0 : i32
    %c0_i32_0 = arith.constant 0 : i32
    %c0_i32_1 = arith.constant 0 : i32
    return %c0_i32, %c0_i32_0 : i32, i32
  }
  func.func @transform_11(%arg0: i32) -> (i32, i32) {
    %c0_i32 = arith.constant 0 : i32
    %c0_i32_0 = arith.constant 0 : i32
    %c0_i32_1 = arith.constant 0 : i32
    return %c0_i32, %c0_i32_0 : i32, i32
  }
  func.func @transform_12(%arg0: i32) -> (i32, i32) {
    %c0_i32 = arith.constant 0 : i32
    %c0_i32_0 = arith.constant 0 : i32
    %c0_i32_1 = arith.constant 0 : i32
    return %c0_i32, %c0_i32_0 : i32, i32
  }
  func.func @transform_13(%arg0: i32) -> (i32, i32) {
    %c0_i32 = arith.constant 0 : i32
    %c0_i32_0 = arith.constant 0 : i32
    return %arg0, %c0_i32 : i32, i32
  }
}

</mosaic_0001>

<bundles_post_ra>
// kernel: tpu_custom_call.1
= control target key start
LH: loop header
LB: loop body
LE: loop exit
PB: predicated region body
PF: predicated region fallthrough
CT: control target
= control target key end

     0   :  { %s2241_s0 = inlined_call_operand.vmem [shape: f32[8,6], index: 0, kind: input, shape index: {}]   ;;  %s2242_s1 = inlined_call_operand.vmem [shape: f32[6,128], index: 1, kind: input, shape index: {}]   ;;  %s2243_s2 = inlined_call_operand.vmem [shape: f32[1,128], index: 2, kind: input, shape index: {}]   ;;  %s2244_s3 = inlined_call_operand.vmem [shape: bf16[128,256], index: 3, kind: input, shape index: {}]   ;;  %s2245_s4 = inlined_call_operand.vmem [shape: f32[1,256], index: 4, kind: input, shape index: {}]   ;;  %s2246_s5 = inlined_call_operand.hbm [shape: bf16[256,512], index: 5, kind: input, shape index: {}]   ;;  %s2247_s6 = inlined_call_operand.vmem [shape: f32[1,512], index: 6, kind: input, shape index: {}]   ;;  %s2248_s7 = inlined_call_operand.hbm [shape: bf16[512,256], index: 7, kind: input, shape index: {}]   ;;  %s2249_s8 = inlined_call_operand.vmem [shape: f32[1,256], index: 8, kind: input, shape index: {}]   ;;  %s2250_s9 = inlined_call_operand.vmem [shape: bf16[256,64], index: 9, kind: input, shape index: {}]   ;;  %s2251_s10 = inlined_call_operand.vmem [shape: f32[1,64], index: 10, kind: input, shape index: {}]   ;;  %s2252_s11 = inlined_call_operand.vmem [shape: f32[1,64], index: 11, kind: input, shape index: {}]   ;;  %s2253_s12 = inlined_call_operand.<no memory space> [shape: f32[1,1], index: 12, kind: input, shape index: {}]   ;;  %s2254_s13 = inlined_call_operand.vmem [shape: f32[8,1], index: 13, kind: output, shape index: {}]  }
   0x1   :  { %v18_v0 = vstv %s2253_s12 }
   0x2   :  { %19 = vst [vmem:[#allocation2] sm:$0x1] %v18_v0 }
   0x3   :  { %20 = vsyncpa [#allocation4], 0 }
   0x4   :  { %21 = vsyncpa [#allocation6], 0  ;;  %s1972_s27 = smov [#allocation3]   ;;  %s1924_s14 = scalar_lea.hbm %s2246_s5, 8192 }
   0x5   :  { %s37_s28 = sshll.u32 %s1972_s27, 4  ;;  %p1925_p0 = scmp.ne.s32.totalorder %s2246_s5, %s1924_s14  ;;  %s38_s28 = int_to_ptr.vmem [resolvable:$true] %s37_s28 }
   0x6   :  { %p1928_p1 = scmp.lt.u32.totalorder %s1924_s14, %s2246_s5 }
   0x8   :  { %p1930_p2 = pnand %p1928_p1, %p1925_p0 }
   0xa   :  { %1933 = shalt.err (!%p1930_p2)
}
   0xb   :  { %s1934_s12 = scalar_lea.vmem %s38_s28, 8192  ;;  %p1939_p4 = scmp.lt.s32.totalorder %s38_s28, %s38_s28 }
   0xc   :  { %p1935_p3 = scmp.ne.s32.totalorder %s38_s28, %s1934_s12  ;;  %p1940_p5 = scmp.lt.s32.totalorder %s1934_s12, %s1934_s12 }
   0xe   :  { %p1941_p6 = por %p1940_p5, %p1939_p4 }
  0x10   :  { %p1942_p7 = pnand %p1941_p6, %p1935_p3 }
  0x12   :  { %1945 = shalt.err (!%p1942_p7)
}
  0x13   :  { %s1973_s19 = smov 256   ;;  %s1974_s20 = smov 16  }
  0x14   :  { %43 = dma.hbm_to_vmem [thread:$0]  %s2246_s5, 8192, %s38_s28, [#allocation4], %s1973_s19, %s1973_s19, %s1974_s20  }
  0x15   :  { %s1975_s23 = smov [#allocation5]   ;;  %s1946_s27 = scalar_lea.hbm %s2248_s7, 8192 }
  0x16   :  { %s51_s24 = sshll.u32 %s1975_s23, 4  ;;  %p1947_p8 = scmp.ne.s32.totalorder %s2248_s7, %s1946_s27  ;;  %s52_s24 = int_to_ptr.vmem [resolvable:$true] %s51_s24 }
  0x17   :  { %p1950_p9 = scmp.lt.u32.totalorder %s1946_s27, %s2248_s7 }
  0x19   :  { %p1952_p10 = pnand %p1950_p9, %p1947_p8 }
  0x1b   :  { %1955 = shalt.err (!%p1952_p10)
}
  0x1c   :  { %s1956_s16 = scalar_lea.vmem %s52_s24, 8192  ;;  %p1961_p12 = scmp.lt.s32.totalorder %s52_s24, %s52_s24 }
  0x1d   :  { %p1957_p11 = scmp.ne.s32.totalorder %s52_s24, %s1956_s16  ;;  %p1962_p13 = scmp.lt.s32.totalorder %s1956_s16, %s1956_s16 }
  0x1f   :  { %p1963_p0 = por %p1962_p13, %p1961_p12 }
  0x21   :  { %p1964_p1 = pnand %p1963_p0, %p1957_p11 }
  0x23   :  { %1967 = shalt.err (!%p1964_p1)
}
  0x24   :  { %s1976_s5 = smov 128   ;;  %s1977_s28 = smov 8  }
  0x25   :  { %57 = dma.hbm_to_vmem [thread:$0]  %s2248_s7, 8192, %s52_s24, [#allocation6], %s1976_s5, %s1976_s5, %s1977_s28  }
  0x26   :  { %1968 = dma.done.wait [#allocation4], 8192  }
  0x27   :  { %1969 = vsyncadd [#allocation4], 4294959104 }
  0x28   :  { %1970 = dma.done.wait [#allocation6], 8192  }
  0x29   :  { %1971 = vsyncadd [#allocation6], 4294959104  ;;  %v1978_v1 = vmov 0   ;;  %v1979_v2 = vmov 2   ;;  %v75_v3 = vld [vmem:[%s2241_s0] sm:$0xff]  ;;  %v1980_v8 = vmov 1   ;;  %v89_v53 = vlaneseq }
  0x2a   :  { %1686 = vset.pattern.permute.xlu0 %v1978_v1  ;;  %1688 = vset.pattern.permute.xlu1 %v1979_v2  ;;  %v1692_v4 = vld [vmem:[%s2244_s3 + $0x4] ss:$8 sps:$4 sm:$0xff]   ;;  %v1694_v5 = vld [vmem:[%s2244_s3] ss:$8 sps:$4 sm:$0xff]   ;;  %v1695_v6 = vld [vmem:[%s2244_s3 + $0x14] ss:$8 sps:$4 sm:$0xff]  }
  0x2b   :  { %287 = vmatprep.mubr.bf16.mxu0 %v1978_v1  ;;  %86 = vperm.xlu0 %1686, %v75_v3   ;;  %v1697_v7 = vld [vmem:[%s2244_s3 + $0x10] ss:$8 sps:$4 sm:$0xff]   ;;  %v1981_v9 = vmov 3   ;;  %v1698_v10 = vld [vmem:[%s2244_s3 + $0x24] ss:$8 sps:$4 sm:$0xff]   ;;  %v1982_v13 = vmov 4  }
  0x2c   :  { %106 = vperm.xlu1 %1688, %v75_v3   ;;  %255 = vmatprep.subr.bf16.mxu0 %v1692_v4  ;;  %v1700_v11 = vld [vmem:[%s2244_s3 + $0x20] ss:$8 sps:$4 sm:$0xff]   ;;  %v1701_v12 = vld [vmem:[%s2244_s3 + $0x34] ss:$8 sps:$4 sm:$0xff]   ;;  %v1983_v14 = vmov 5   ;;  %v2132_v54 = vshrl.u32 %v89_v53, 7 }
  0x2d   :  { %256 = vmatpush1.bf16.msra.mxu0 %v1694_v5  ;;  %v1703_v15 = vld [vmem:[%s2244_s3 + $0x30] ss:$8 sps:$4 sm:$0xff]   ;;  %v1704_v16 = vld [vmem:[%s2244_s3 + $0x44] ss:$8 sps:$4 sm:$0xff]   ;;  %v1706_v17 = vld [vmem:[%s2244_s3 + $0x40] ss:$8 sps:$4 sm:$0xff]  }
  0x2e   :  { %257 = vmatprep.subr.bf16.mxu0 %v1695_v6  ;;  %v1707_v18 = vld [vmem:[%s2244_s3 + $0x54] ss:$8 sps:$4 sm:$0xff]   ;;  %v1709_v19 = vld [vmem:[%s2244_s3 + $0x50] ss:$8 sps:$4 sm:$0xff]   ;;  %v1710_v20 = vld [vmem:[%s2244_s3 + $0x64] ss:$8 sps:$4 sm:$0xff]  }
  0x2f   :  { %1687 = vset.pattern.permute.xlu0 %v1980_v8  ;;  %v1716_v21 = vld [vmem:[#allocation3 + $0x4] ss:$16 sps:$4 sm:$0xff]   ;;  %v1721_v23 = vld [vmem:[#allocation3] ss:$16 sps:$4 sm:$0xff]   ;;  %v1720_v28 = vld [vmem:[#allocation3 + $0xc] ss:$16 sps:$4 sm:$0xff]  }
  0x30   :  { %1689 = vset.pattern.permute.xlu1 %v1981_v9  ;;  %96 = vperm.xlu0 %1687, %v75_v3   ;;  %v1712_v22 = vld [vmem:[%s2244_s3 + $0x60] ss:$8 sps:$4 sm:$0xff]   ;;  %v1713_v25 = vld [vmem:[%s2244_s3 + $0x74] ss:$8 sps:$4 sm:$0xff]   ;;  %v1715_v27 = vld [vmem:[%s2244_s3 + $0x70] ss:$8 sps:$4 sm:$0xff]  }
  0x31   :  { %116 = vperm.xlu1 %1689, %v75_v3   ;;  %258 = vmatpush1.bf16.msra.mxu0 %v1697_v7  ;;  %v1722_v24 = vld [vmem:[#allocation3 + $0x24] ss:$16 sps:$4 sm:$0xff]   ;;  %v1727_v26 = vld [vmem:[#allocation3 + $0x20] ss:$16 sps:$4 sm:$0xff]   ;;  %v2135_v55 = vsub.s32 0, %v2132_v54  ;;  %v2142_v58 = vsub.s32 1, %v2132_v54 }
  0x32   :  { %259 = vmatprep.subr.bf16.mxu0 %v1698_v10  ;;  %706 = vmatprep.subr.bf16.mxu1 %v1716_v21  ;;  %v1728_v29 = vld [vmem:[#allocation3 + $0x44] ss:$16 sps:$4 sm:$0xff]   ;;  %v1733_v30 = vld [vmem:[#allocation3 + $0x40] ss:$16 sps:$4 sm:$0xff]   ;;  %v111_v60 = vsub.s32 2, %v2132_v54  ;;  %v121_v0 = vsub.s32 3, %v2132_v54 }
  0x33   :  { %707 = vmatpush1.bf16.msra.mxu1 %v1721_v23  ;;  %v1734_v31 = vld [vmem:[#allocation3 + $0x64] ss:$16 sps:$4 sm:$0xff]   ;;  %v1739_v32 = vld [vmem:[#allocation3 + $0x60] ss:$16 sps:$4 sm:$0xff]   ;;  %v1482_v1 = vld [vmem:[%s2243_s2] ss:$0 sm:$0xff] }
  0x34   :  { %1691 = vset.pattern.permute.xlu0 %v1983_v14  ;;  %708 = vmatprep.subr.bf16.mxu1 %v1722_v24  ;;  %v1740_v33 = vld [vmem:[#allocation3 + $0x84] ss:$16 sps:$4 sm:$0xff]   ;;  %v1745_v34 = vld [vmem:[#allocation3 + $0x80] ss:$16 sps:$4 sm:$0xff]   ;;  %v131_v2 = vsub.s32 4, %v2132_v54  ;;  %v141_v4 = vsub.s32 5, %v2132_v54 }
  0x35   :  { %1690 = vset.pattern.permute.xlu1 %v1982_v13  ;;  %136 = vperm.xlu0 %1691, %v75_v3   ;;  %v1746_v35 = vld [vmem:[#allocation3 + $0xa4] ss:$16 sps:$4 sm:$0xff]   ;;  %v1751_v36 = vld [vmem:[#allocation3 + $0xa0] ss:$16 sps:$4 sm:$0xff]   ;;  %v1718_v24 = vld [vmem:[#allocation3 + $0x8] ss:$16 sps:$4 sm:$0xff]  }
  0x36   :  { %126 = vperm.xlu1 %1690, %v75_v3   ;;  %260 = vmatpush1.bf16.msra.mxu0 %v1700_v11  ;;  %v1752_v37 = vld [vmem:[#allocation3 + $0xc4] ss:$16 sps:$4 sm:$0xff]   ;;  %v1757_v38 = vld [vmem:[#allocation3 + $0xc0] ss:$16 sps:$4 sm:$0xff]   ;;  %v1804_v53 = vld [vmem:[#allocation3 + $0x1cc] ss:$16 sps:$4 sm:$0xff]  }
  0x37   :  { %261 = vmatprep.subr.bf16.mxu0 %v1701_v12  ;;  %709 = vmatpush1.bf16.msra.mxu1 %v1727_v26  ;;  %v1758_v39 = vld [vmem:[#allocation3 + $0xe4] ss:$16 sps:$4 sm:$0xff]   ;;  %v1763_v40 = vld [vmem:[#allocation3 + $0xe0] ss:$16 sps:$4 sm:$0xff]   ;;  %v1726_v26 = vld [vmem:[#allocation3 + $0x2c] ss:$16 sps:$4 sm:$0xff]  }
  0x38   :  { %710 = vmatprep.subr.bf16.mxu1 %v1728_v29  ;;  %v1764_v41 = vld [vmem:[#allocation3 + $0x104] ss:$16 sps:$4 sm:$0xff]   ;;  %v1769_v42 = vld [vmem:[#allocation3 + $0x100] ss:$16 sps:$4 sm:$0xff]   ;;  %v1730_v29 = vld [vmem:[#allocation3 + $0x48] ss:$16 sps:$4 sm:$0xff]  }
  0x39   :  { %v1770_v43 = vld [vmem:[#allocation3 + $0x124] ss:$16 sps:$4 sm:$0xff]   ;;  %v1775_v44 = vld [vmem:[#allocation3 + $0x120] ss:$16 sps:$4 sm:$0xff]   ;;  %vm1463_vm0 = vcmask 523264   ;;  %vm1474_vm1 = vcmask 7168  }
  0x3a   :  { %262 = vmatpush1.bf16.msra.mxu0 %v1703_v15  ;;  %v1776_v45 = vld [vmem:[#allocation3 + $0x144] ss:$16 sps:$4 sm:$0xff]   ;;  %v1781_v46 = vld [vmem:[#allocation3 + $0x140] ss:$16 sps:$4 sm:$0xff]  }
  0x3b   :  { %263 = vmatprep.subr.bf16.mxu0 %v1704_v16  ;;  %711 = vmatpush1.bf16.msra.mxu1 %v1733_v30  ;;  %v1782_v47 = vld [vmem:[#allocation3 + $0x164] ss:$16 sps:$4 sm:$0xff]   ;;  %v1787_v48 = vld [vmem:[#allocation3 + $0x160] ss:$16 sps:$4 sm:$0xff]   ;;  %v1738_v30 = vld [vmem:[#allocation3 + $0x6c] ss:$16 sps:$4 sm:$0xff]  }
  0x3c   :  { %712 = vmatprep.subr.bf16.mxu1 %v1734_v31  ;;  %v1788_v49 = vld [vmem:[#allocation3 + $0x184] ss:$16 sps:$4 sm:$0xff]   ;;  %v1793_v50 = vld [vmem:[#allocation3 + $0x180] ss:$16 sps:$4 sm:$0xff]   ;;  %v1736_v31 = vld [vmem:[#allocation3 + $0x68] ss:$16 sps:$4 sm:$0xff]  }
  0x3d   :  { %v1794_v51 = vld [vmem:[#allocation3 + $0x1a4] ss:$16 sps:$4 sm:$0xff]   ;;  %v1799_v52 = vld [vmem:[#allocation3 + $0x1a0] ss:$16 sps:$4 sm:$0xff]  }
  0x3e   :  { %264 = vmatpush1.bf16.msra.mxu0 %v1706_v17  ;;  %v76_v56 = vld [vmem:[%s2242_s1] sm:$0x3f]  ;;  %v1920_v54 = vld [vmem:[%s2250_s9 + $0x70] sm:$0xff]  }
  0x3f   :  { %265 = vmatprep.subr.bf16.mxu0 %v1707_v18  ;;  %713 = vmatpush1.bf16.msra.mxu1 %v1739_v32  ;;  %v92_v57 = vrot.slane %v76_v56, %v2135_v55  ;;  %v102_v63 = vrot.slane %v76_v56, %v2142_v58  ;;  %v112_v3 = vrot.slane %v76_v56, %v111_v60  ;;  %v1744_v32 = vld [vmem:[#allocation3 + $0x8c] ss:$16 sps:$4 sm:$0xff]  }
  0x40   :  { %714 = vmatprep.subr.bf16.mxu1 %v1740_v33  ;;  %v122_v9 = vrot.slane %v76_v56, %v121_v0  ;;  %v132_v10 = vrot.slane %v76_v56, %v131_v2  ;;  %v142_v13 = vrot.slane %v76_v56, %v141_v4  ;;  %v1742_v33 = vld [vmem:[#allocation3 + $0x88] ss:$16 sps:$4 sm:$0xff]   ;;  %v162_v2 = vld [vmem:[%s2245_s4] sm:$0x3] }
  0x41   :  { %v1802_v56 = vld [vmem:[#allocation3 + $0x1c8] ss:$16 sps:$4 sm:$0xff]   ;;  %v172_v4 = vrot.slane %v162_v2, %v2142_v58 }
  0x42   :  { %266 = vmatpush1.bf16.msra.mxu0 %v1709_v19 }
  0x43   :  { %267 = vmatprep.subr.bf16.mxu0 %v1710_v20  ;;  %715 = vmatpush1.bf16.msra.mxu1 %v1745_v34  ;;  %v1750_v34 = vld [vmem:[#allocation3 + $0xac] ss:$16 sps:$4 sm:$0xff]  }
  0x44   :  { %716 = vmatprep.subr.bf16.mxu1 %v1746_v35  ;;  %v1748_v35 = vld [vmem:[#allocation3 + $0xa8] ss:$16 sps:$4 sm:$0xff]  }
  0x46   :  { %268 = vmatpush1.bf16.msra.mxu0 %v1712_v22 }
  0x47   :  { %269 = vmatprep.subr.bf16.mxu0 %v1713_v25  ;;  %717 = vmatpush1.bf16.msra.mxu1 %v1751_v36  ;;  %v1756_v36 = vld [vmem:[#allocation3 + $0xcc] ss:$16 sps:$4 sm:$0xff]  }
  0x48   :  { %718 = vmatprep.subr.bf16.mxu1 %v1752_v37  ;;  %v1754_v37 = vld [vmem:[#allocation3 + $0xc8] ss:$16 sps:$4 sm:$0xff]  }
  0x4a   :  { %270 = vmatpush1.bf16.msra.mxu0 %v1715_v27  ;;  %v1724_v27 = vld [vmem:[#allocation3 + $0x28] ss:$16 sps:$4 sm:$0xff]  }
  0x4b   :  { %747 = vmatprep.subr.bf16.mxu0 %v1720_v28  ;;  %719 = vmatpush1.bf16.msra.mxu1 %v1757_v38  ;;  %v1732_v28 = vld [vmem:[#allocation3 + $0x4c] ss:$16 sps:$4 sm:$0xff]  }
  0x4c   :  { %720 = vmatprep.subr.bf16.mxu1 %v1758_v39  ;;  %v1762_v38 = vld [vmem:[#allocation3 + $0xec] ss:$16 sps:$4 sm:$0xff]   ;;  %v1760_v39 = vld [vmem:[#allocation3 + $0xe8] ss:$16 sps:$4 sm:$0xff]  }
  0x4f   :  { %721 = vmatpush1.bf16.msra.mxu1 %v1763_v40  ;;  %v1768_v40 = vld [vmem:[#allocation3 + $0x10c] ss:$16 sps:$4 sm:$0xff]  }
  0x50   :  { %722 = vmatprep.subr.bf16.mxu1 %v1764_v41  ;;  %v1766_v41 = vld [vmem:[#allocation3 + $0x108] ss:$16 sps:$4 sm:$0xff]  }
  0x53   :  { %723 = vmatpush1.bf16.msra.mxu1 %v1769_v42  ;;  %v1774_v42 = vld [vmem:[#allocation3 + $0x12c] ss:$16 sps:$4 sm:$0xff]  }
  0x54   :  { %724 = vmatprep.subr.bf16.mxu1 %v1770_v43  ;;  %v1772_v43 = vld [vmem:[#allocation3 + $0x128] ss:$16 sps:$4 sm:$0xff]  }
  0x57   :  { %725 = vmatpush1.bf16.msra.mxu1 %v1775_v44  ;;  %v1780_v44 = vld [vmem:[#allocation3 + $0x14c] ss:$16 sps:$4 sm:$0xff]  }
  0x58   :  { %726 = vmatprep.subr.bf16.mxu1 %v1776_v45  ;;  %v1778_v45 = vld [vmem:[#allocation3 + $0x148] ss:$16 sps:$4 sm:$0xff]  }
  0x5b   :  { %727 = vmatpush1.bf16.msra.mxu1 %v1781_v46  ;;  %v1786_v46 = vld [vmem:[#allocation3 + $0x16c] ss:$16 sps:$4 sm:$0xff]  }
  0x5c   :  { %728 = vmatprep.subr.bf16.mxu1 %v1782_v47  ;;  %v1784_v47 = vld [vmem:[#allocation3 + $0x168] ss:$16 sps:$4 sm:$0xff]  }
  0x5f   :  { %729 = vmatpush1.bf16.msra.mxu1 %v1787_v48  ;;  %v1792_v48 = vld [vmem:[#allocation3 + $0x18c] ss:$16 sps:$4 sm:$0xff]  }
  0x60   :  { %730 = vmatprep.subr.bf16.mxu1 %v1788_v49  ;;  %v1790_v49 = vld [vmem:[#allocation3 + $0x188] ss:$16 sps:$4 sm:$0xff]  }
  0x63   :  { %731 = vmatpush1.bf16.msra.mxu1 %v1793_v50  ;;  %v1798_v50 = vld [vmem:[#allocation3 + $0x1ac] ss:$16 sps:$4 sm:$0xff]  }
  0x64   :  { %732 = vmatprep.subr.bf16.mxu1 %v1794_v51  ;;  %v1796_v51 = vld [vmem:[#allocation3 + $0x1a8] ss:$16 sps:$4 sm:$0xff]  }
  0x67   :  { %733 = vmatpush1.bf16.msra.mxu1 %v1799_v52  ;;  %v1800_v52 = vld [vmem:[#allocation3 + $0x1c4] ss:$16 sps:$4 sm:$0xff]  }
  0x68   :  { %734 = vmatprep.subr.bf16.mxu1 %v1800_v52  ;;  %v1913_v52 = vld [vmem:[%s2250_s9 + $0x10] sm:$0xff]  }
  0xaa   :  { %v87_v59 = vpop.permute.xlu0 %86 }
  0xab   :  { %v107_v61 = vpop.permute.xlu1 %106  ;;  %v93_v62 = vmul.f32 %v92_v57, %v87_v59  ;;  %v1805_v57 = vld [vmem:[#allocation3 + $0x1c0] ss:$16 sps:$4 sm:$0xff]   ;;  %v1806_v59 = vld [vmem:[#allocation3 + $0x1e4] ss:$16 sps:$4 sm:$0xff]  }
  0xac   :  { %v113_v11 = vmul.f32 %v112_v3, %v107_v61  ;;  %735 = vmatpush1.bf16.msra.mxu1 %v1805_v57  ;;  %v1810_v61 = vld [vmem:[#allocation3 + $0x1ec] ss:$16 sps:$4 sm:$0xff]   ;;  %v168_v3 = vrot.slane %v162_v2, %v2135_v55 }
  0xad   :  { %v94_v7 = vadd.f32 %v1482_v1, %v93_v62  ;;  %v1808_v62 = vld [vmem:[#allocation3 + $0x1e8] ss:$16 sps:$4 sm:$0xff]   ;;  %736 = vmatprep.subr.bf16.mxu1 %v1806_v59  ;;  %v1814_v1 = vld [vmem:[#allocation5 + $0x4] ss:$8 sps:$4 sm:$0xff]  }
  0xae   :  { %v1916_v57 = vld [vmem:[%s2250_s9 + $0x60] sm:$0xff]  }
  0xaf   :  { %v97_v5 = vpop.permute.xlu0 %96  ;;  %v1917_v59 = vld [vmem:[%s2250_s9 + $0x20] sm:$0xff]  }
  0xb0   :  { %v117_v6 = vpop.permute.xlu1 %116  ;;  %v103_v8 = vmul.f32 %v102_v63, %v97_v5  ;;  %v1811_v63 = vld [vmem:[#allocation3 + $0x1e0] ss:$16 sps:$4 sm:$0xff]  }
  0xb1   :  { %v123_v15 = vmul.f32 %v122_v9, %v117_v6  ;;  %737 = vmatpush1.bf16.msra.mxu1 %v1811_v63  ;;  %v2200_v63 = vld [vmem:[%s2247_s6] sm:$0xf] }
  0xb2   :  { %v104_v12 = vadd.f32 %v103_v8, %v94_v7  ;;  %1192 = vmatprep.subr.bf16.mxu1 %v1814_v1  ;;  %v369_v1 = vrot.slane %v2200_v63, %v2135_v55  ;;  %v373_v2 = vrot.slane %v2200_v63, %v2142_v58 }
  0xb4   :  { %v114_v14 = vadd.f32 %v113_v11, %v104_v12  ;;  %v137_v17 = vpop.permute.xlu0 %136 }
  0xb5   :  { %v127_v16 = vpop.permute.xlu1 %126  ;;  %v143_v20 = vmul.f32 %v142_v13, %v137_v17  ;;  %v1815_v17 = vld [vmem:[#allocation5 + $0x10] ss:$8 sps:$4 sm:$0xff]  }
  0xb6   :  { %v133_v18 = vmul.f32 %v132_v10, %v127_v16  ;;  %v124_v19 = vadd.f32 %v123_v15, %v114_v14  ;;  %v1812_v14 = vld [vmem:[#allocation5] ss:$8 sps:$4 sm:$0xff]   ;;  %v1817_v16 = vld [vmem:[#allocation5 + $0x14] ss:$8 sps:$4 sm:$0xff]  }
  0xb8   :  { %v134_v21 = vadd.f32 %v133_v18, %v124_v19  ;;  %v1820_v18 = vld [vmem:[#allocation5 + $0x24] ss:$8 sps:$4 sm:$0xff]   ;;  %v1818_v19 = vld [vmem:[#allocation5 + $0x20] ss:$8 sps:$4 sm:$0xff]  }
  0xba   :  { %v144_v22 = vadd.f32 %v143_v20, %v134_v21  ;;  %v1823_v20 = vld [vmem:[#allocation5 + $0x34] ss:$8 sps:$4 sm:$0xff]   ;;  %v1821_v21 = vld [vmem:[#allocation5 + $0x30] ss:$8 sps:$4 sm:$0xff]  }
  0xbc   :  { %v145_v23 = vmax.f32 %v144_v22, 0.0  ;;  %v1826_v22 = vld [vmem:[#allocation5 + $0x44] ss:$8 sps:$4 sm:$0xff]  }
  0xbe   :  { %v163_v25 = vpack.c.bf16 %v145_v23, %v145_v23  ;;  %v1824_v23 = vld [vmem:[#allocation5 + $0x40] ss:$8 sps:$4 sm:$0xff]  }
  0xc0   :  { %288 = vmatmul.mubr.bf16.vlgmr.msra.gmra.mrb[0].mxu0 %v163_v25  ;;  %v1827_v25 = vld [vmem:[#allocation5 + $0x50] ss:$8 sps:$4 sm:$0xff]  }
  0xc1   :  { %748 = vmatpush1.bf16.msra.mxu0 %v1718_v24  ;;  %v1829_v24 = vld [vmem:[#allocation5 + $0x54] ss:$8 sps:$4 sm:$0xff]  }
  0xc2   :  { %749 = vmatprep.subr.bf16.mxu0 %v1726_v26  ;;  %v1832_v26 = vld [vmem:[#allocation5 + $0x64] ss:$8 sps:$4 sm:$0xff]  }
  0xc5   :  { %750 = vmatpush1.bf16.msra.mxu0 %v1724_v27  ;;  %v1830_v27 = vld [vmem:[#allocation5 + $0x60] ss:$8 sps:$4 sm:$0xff]  }
  0xc6   :  { %751 = vmatprep.subr.bf16.mxu0 %v1732_v28  ;;  %v1835_v28 = vld [vmem:[#allocation5 + $0x74] ss:$8 sps:$4 sm:$0xff]  }
  0xc9   :  { %752 = vmatpush1.bf16.msra.mxu0 %v1730_v29  ;;  %v1833_v29 = vld [vmem:[#allocation5 + $0x70] ss:$8 sps:$4 sm:$0xff]  }
  0xca   :  { %753 = vmatprep.subr.bf16.mxu0 %v1738_v30  ;;  %v1838_v30 = vld [vmem:[#allocation5 + $0x84] ss:$8 sps:$4 sm:$0xff]  }
  0xcd   :  { %754 = vmatpush1.bf16.msra.mxu0 %v1736_v31  ;;  %v1836_v31 = vld [vmem:[#allocation5 + $0x80] ss:$8 sps:$4 sm:$0xff]  }
  0xce   :  { %755 = vmatprep.subr.bf16.mxu0 %v1744_v32  ;;  %v1841_v32 = vld [vmem:[#allocation5 + $0x94] ss:$8 sps:$4 sm:$0xff]  }
  0xd1   :  { %756 = vmatpush1.bf16.msra.mxu0 %v1742_v33  ;;  %v1839_v33 = vld [vmem:[#allocation5 + $0x90] ss:$8 sps:$4 sm:$0xff]  }
  0xd2   :  { %757 = vmatprep.subr.bf16.mxu0 %v1750_v34  ;;  %v1844_v34 = vld [vmem:[#allocation5 + $0xa4] ss:$8 sps:$4 sm:$0xff]  }
  0xd5   :  { %758 = vmatpush1.bf16.msra.mxu0 %v1748_v35  ;;  %v1842_v35 = vld [vmem:[#allocation5 + $0xa0] ss:$8 sps:$4 sm:$0xff]  }
  0xd6   :  { %759 = vmatprep.subr.bf16.mxu0 %v1756_v36  ;;  %v1847_v36 = vld [vmem:[#allocation5 + $0xb4] ss:$8 sps:$4 sm:$0xff]  }
  0xd9   :  { %760 = vmatpush1.bf16.msra.mxu0 %v1754_v37  ;;  %v1845_v37 = vld [vmem:[#allocation5 + $0xb0] ss:$8 sps:$4 sm:$0xff]  }
  0xda   :  { %761 = vmatprep.subr.bf16.mxu0 %v1762_v38  ;;  %v1850_v38 = vld [vmem:[#allocation5 + $0xc4] ss:$8 sps:$4 sm:$0xff]  }
  0xdd   :  { %762 = vmatpush1.bf16.msra.mxu0 %v1760_v39  ;;  %v1848_v39 = vld [vmem:[#allocation5 + $0xc0] ss:$8 sps:$4 sm:$0xff]  }
  0xde   :  { %763 = vmatprep.subr.bf16.mxu0 %v1768_v40  ;;  %v1853_v40 = vld [vmem:[#allocation5 + $0xd4] ss:$8 sps:$4 sm:$0xff]  }
  0xe1   :  { %764 = vmatpush1.bf16.msra.mxu0 %v1766_v41  ;;  %v1851_v41 = vld [vmem:[#allocation5 + $0xd0] ss:$8 sps:$4 sm:$0xff]  }
  0xe2   :  { %765 = vmatprep.subr.bf16.mxu0 %v1774_v42  ;;  %v1856_v42 = vld [vmem:[#allocation5 + $0xe4] ss:$8 sps:$4 sm:$0xff]  }
  0xe5   :  { %766 = vmatpush1.bf16.msra.mxu0 %v1772_v43  ;;  %v1854_v43 = vld [vmem:[#allocation5 + $0xe0] ss:$8 sps:$4 sm:$0xff]  }
  0xe6   :  { %767 = vmatprep.subr.bf16.mxu0 %v1780_v44  ;;  %v1859_v44 = vld [vmem:[#allocation5 + $0xf4] ss:$8 sps:$4 sm:$0xff]  }
  0xe9   :  { %768 = vmatpush1.bf16.msra.mxu0 %v1778_v45  ;;  %v1857_v45 = vld [vmem:[#allocation5 + $0xf0] ss:$8 sps:$4 sm:$0xff]  }
  0xea   :  { %769 = vmatprep.subr.bf16.mxu0 %v1786_v46  ;;  %v1862_v46 = vld [vmem:[#allocation5 + $0x104] ss:$8 sps:$4 sm:$0xff]  }
  0xed   :  { %770 = vmatpush1.bf16.msra.mxu0 %v1784_v47  ;;  %v1908_v47 = vld [vmem:[%s2250_s9 + $0x40] sm:$0xff]  }
  0xee   :  { %771 = vmatprep.subr.bf16.mxu0 %v1792_v48  ;;  %v1909_v48 = vld [vmem:[%s2250_s9] sm:$0xff]  }
  0xf1   :  { %772 = vmatpush1.bf16.msra.mxu0 %v1790_v49  ;;  %v1910_v49 = vld [vmem:[%s2250_s9 + $0x48] sm:$0xff]  }
  0xf2   :  { %773 = vmatprep.subr.bf16.mxu0 %v1798_v50  ;;  %v1911_v50 = vld [vmem:[%s2250_s9 + $0x8] sm:$0xff]  }
  0xf5   :  { %774 = vmatpush1.bf16.msra.mxu0 %v1796_v51  ;;  %v1912_v51 = vld [vmem:[%s2250_s9 + $0x50] sm:$0xff]  }
  0xf6   :  { %775 = vmatprep.subr.bf16.mxu0 %v1804_v53  ;;  %v1914_v53 = vld [vmem:[%s2250_s9 + $0x58] sm:$0xff]  }
  0xf9   :  { %776 = vmatpush1.bf16.msra.mxu0 %v1802_v56  ;;  %v1915_v56 = vld [vmem:[%s2250_s9 + $0x18] sm:$0xff]  }
  0xfa   :  { %777 = vmatprep.subr.bf16.mxu0 %v1810_v61  ;;  %v1918_v61 = vld [vmem:[%s2250_s9 + $0x68] sm:$0xff]  }
  0xfd   :  { %778 = vmatpush1.bf16.msra.mxu0 %v1808_v62  ;;  %v1919_v62 = vld [vmem:[%s2250_s9 + $0x28] sm:$0xff]  }
  0xfe   :  { %1646 = vmatprep.subr.bf16.mxu0 %v1908_v47  ;;  %v377_v47 = vrot.slane %v2200_v63, %v111_v60  ;;  %v1921_v60 = vld [vmem:[%s2250_s9 + $0x30] sm:$0xff]  }
 0x193   :  { %v289_v5 = vpop.f32.mrb[0].mxu0 }
 0x194   :  { %v290_v6 = vadd.f32 %v289_v5, %v168_v3  ;;  %v291_v7 = vpop.f32.mrb[1].mxu0  ;;  %v381_v3 = vrot.slane %v2200_v63, %v121_v0 }
 0x195   :  { %v292_v8 = vadd.f32 %v291_v7, %v172_v4  ;;  %v293_v9 = vpop.f32.mrb[2].mxu0 }
 0x196   :  { %v296_v10 = vmax.f32 %v290_v6, 0.0  ;;  %v294_v11 = vpop.f32.mrb[3].mxu0 }
 0x197   :  { %v297_v12 = vmax.f32 %v292_v8, 0.0 }
 0x198   :  { %v363_v15 = vpack.c.bf16 %v296_v10, %v296_v10 }
 0x199   :  { %v364_v13 = vpack.c.bf16 %v297_v12, %v297_v12 }
 0x19b   :  { %738 = vmatprep.mubr.bf16.mxu1 %v364_v13  ;;  %779 = vmatprep.mubr.bf16.mxu0 %v364_v13 }
 0x19c   :  { %739 = vmatmul.mubr.bf16.vlgmr.msra.gmra.mrb[0].mxu1 %v363_v15  ;;  %780 = vmatmul.mubr.bf16.vlgmr.msra.gmra.mrb[4].mxu0 %v363_v15 }
 0x19d   :  { %1193 = vmatpush1.bf16.msra.mxu1 %v1812_v14  ;;  %1647 = vmatpush3.bf16.msra.mxu0 %v1909_v48  ;;  %v1904_v48 = vld [vmem:[#allocation5 + $0x1e4] ss:$8 sps:$4 sm:$0xff]  }
 0x19e   :  { %1194 = vmatprep.subr.bf16.mxu1 %v1817_v16  ;;  %1648 = vmatprep.subr.bf16.mxu0 %v1910_v49  ;;  %v1902_v49 = vld [vmem:[#allocation5 + $0x1e0] ss:$8 sps:$4 sm:$0xff]  }
 0x1a1   :  { %1195 = vmatpush1.bf16.msra.mxu1 %v1815_v17  ;;  %1649 = vmatpush3.bf16.msra.mxu0 %v1911_v50 }
 0x1a2   :  { %1196 = vmatprep.subr.bf16.mxu1 %v1820_v18  ;;  %1650 = vmatprep.subr.bf16.mxu0 %v1912_v51  ;;  %v1907_v51 = vld [vmem:[#allocation5 + $0x1f4] ss:$8 sps:$4 sm:$0xff]  }
 0x1a5   :  { %1197 = vmatpush1.bf16.msra.mxu1 %v1818_v19  ;;  %1651 = vmatpush3.bf16.msra.mxu0 %v1913_v52  ;;  %v1860_v19 = vld [vmem:[#allocation5 + $0x100] ss:$8 sps:$4 sm:$0xff]   ;;  %v1905_v52 = vld [vmem:[#allocation5 + $0x1f0] ss:$8 sps:$4 sm:$0xff]  }
 0x1a6   :  { %1198 = vmatprep.subr.bf16.mxu1 %v1823_v20  ;;  %1652 = vmatprep.subr.bf16.mxu0 %v1914_v53 }
 0x1a9   :  { %1199 = vmatpush1.bf16.msra.mxu1 %v1821_v21  ;;  %1653 = vmatpush3.bf16.msra.mxu0 %v1915_v56  ;;  %v1865_v21 = vld [vmem:[#allocation5 + $0x114] ss:$8 sps:$4 sm:$0xff]  }
 0x1aa   :  { %1200 = vmatprep.subr.bf16.mxu1 %v1826_v22  ;;  %1654 = vmatprep.subr.bf16.mxu0 %v1916_v57  ;;  %v1863_v22 = vld [vmem:[#allocation5 + $0x110] ss:$8 sps:$4 sm:$0xff]  }
 0x1ab   :  { %v1922_v57 = vld [vmem:[%s2250_s9 + $0x78] sm:$0xff]  }
 0x1ad   :  { %1201 = vmatpush1.bf16.msra.mxu1 %v1824_v23  ;;  %1655 = vmatpush3.bf16.msra.mxu0 %v1917_v59  ;;  %v1868_v23 = vld [vmem:[#allocation5 + $0x124] ss:$8 sps:$4 sm:$0xff]   ;;  %v1923_v59 = vld [vmem:[%s2250_s9 + $0x38] sm:$0xff]  }
 0x1ae   :  { %1202 = vmatprep.subr.bf16.mxu1 %v1829_v24  ;;  %1656 = vmatprep.subr.bf16.mxu0 %v1918_v61  ;;  %v1866_v24 = vld [vmem:[#allocation5 + $0x120] ss:$8 sps:$4 sm:$0xff]  }
 0x1af   :  { %v856_v61 = vld [vmem:[%s2249_s8] sm:$0x3] }
 0x1b0   :  { %v869_v63 = vrot.slane %v856_v61, %v2142_v58 }
 0x1b1   :  { %1203 = vmatpush1.bf16.msra.mxu1 %v1827_v25  ;;  %1657 = vmatpush3.bf16.msra.mxu0 %v1919_v62  ;;  %v1871_v25 = vld [vmem:[#allocation5 + $0x134] ss:$8 sps:$4 sm:$0xff]   ;;  %v865_v62 = vrot.slane %v856_v61, %v2135_v55 }
 0x1b2   :  { %1204 = vmatprep.subr.bf16.mxu1 %v1832_v26  ;;  %v1869_v26 = vld [vmem:[#allocation5 + $0x130] ss:$8 sps:$4 sm:$0xff]   ;;  %1658 = vmatprep.subr.bf16.mxu0 %v1920_v54 }
 0x1b5   :  { %1205 = vmatpush1.bf16.msra.mxu1 %v1830_v27  ;;  %v1874_v27 = vld [vmem:[#allocation5 + $0x144] ss:$8 sps:$4 sm:$0xff]   ;;  %1659 = vmatpush3.bf16.msra.mxu0 %v1921_v60 }
 0x1b6   :  { %1206 = vmatprep.subr.bf16.mxu1 %v1835_v28  ;;  %v1872_v28 = vld [vmem:[#allocation5 + $0x140] ss:$8 sps:$4 sm:$0xff]   ;;  %1660 = vmatprep.subr.bf16.mxu0 %v1922_v57 }
 0x1b9   :  { %1207 = vmatpush1.bf16.msra.mxu1 %v1833_v29  ;;  %v1877_v29 = vld [vmem:[#allocation5 + $0x154] ss:$8 sps:$4 sm:$0xff]   ;;  %1661 = vmatpush3.bf16.msra.mxu0 %v1923_v59 }
 0x1ba   :  { %1208 = vmatprep.subr.bf16.mxu1 %v1838_v30  ;;  %v1875_v30 = vld [vmem:[#allocation5 + $0x150] ss:$8 sps:$4 sm:$0xff]  }
 0x1bd   :  { %1209 = vmatpush1.bf16.msra.mxu1 %v1836_v31  ;;  %v1880_v31 = vld [vmem:[#allocation5 + $0x164] ss:$8 sps:$4 sm:$0xff]  }
 0x1be   :  { %1210 = vmatprep.subr.bf16.mxu1 %v1841_v32  ;;  %v1878_v32 = vld [vmem:[#allocation5 + $0x160] ss:$8 sps:$4 sm:$0xff]  }
 0x1c1   :  { %1211 = vmatpush1.bf16.msra.mxu1 %v1839_v33  ;;  %v1883_v33 = vld [vmem:[#allocation5 + $0x174] ss:$8 sps:$4 sm:$0xff]  }
 0x1c2   :  { %1212 = vmatprep.subr.bf16.mxu1 %v1844_v34  ;;  %v1881_v34 = vld [vmem:[#allocation5 + $0x170] ss:$8 sps:$4 sm:$0xff]  }
 0x1c5   :  { %1213 = vmatpush1.bf16.msra.mxu1 %v1842_v35  ;;  %v1886_v35 = vld [vmem:[#allocation5 + $0x184] ss:$8 sps:$4 sm:$0xff]  }
 0x1c6   :  { %1214 = vmatprep.subr.bf16.mxu1 %v1847_v36  ;;  %v1884_v36 = vld [vmem:[#allocation5 + $0x180] ss:$8 sps:$4 sm:$0xff]  }
 0x1c9   :  { %1215 = vmatpush1.bf16.msra.mxu1 %v1845_v37  ;;  %v1889_v37 = vld [vmem:[#allocation5 + $0x194] ss:$8 sps:$4 sm:$0xff]  }
 0x1ca   :  { %1216 = vmatprep.subr.bf16.mxu1 %v1850_v38  ;;  %v1887_v38 = vld [vmem:[#allocation5 + $0x190] ss:$8 sps:$4 sm:$0xff]  }
 0x1cd   :  { %1217 = vmatpush1.bf16.msra.mxu1 %v1848_v39  ;;  %v1892_v39 = vld [vmem:[#allocation5 + $0x1a4] ss:$8 sps:$4 sm:$0xff]  }
 0x1ce   :  { %1218 = vmatprep.subr.bf16.mxu1 %v1853_v40  ;;  %v1890_v40 = vld [vmem:[#allocation5 + $0x1a0] ss:$8 sps:$4 sm:$0xff]  }
 0x1d1   :  { %1219 = vmatpush1.bf16.msra.mxu1 %v1851_v41  ;;  %v1895_v41 = vld [vmem:[#allocation5 + $0x1b4] ss:$8 sps:$4 sm:$0xff]  }
 0x1d2   :  { %1220 = vmatprep.subr.bf16.mxu1 %v1856_v42  ;;  %v1893_v42 = vld [vmem:[#allocation5 + $0x1b0] ss:$8 sps:$4 sm:$0xff]  }
 0x1d5   :  { %1221 = vmatpush1.bf16.msra.mxu1 %v1854_v43  ;;  %v1898_v43 = vld [vmem:[#allocation5 + $0x1c4] ss:$8 sps:$4 sm:$0xff]  }
 0x1d6   :  { %1222 = vmatprep.subr.bf16.mxu1 %v1859_v44  ;;  %v1896_v44 = vld [vmem:[#allocation5 + $0x1c0] ss:$8 sps:$4 sm:$0xff]  }
 0x1d9   :  { %1223 = vmatpush1.bf16.msra.mxu1 %v1857_v45  ;;  %v1901_v45 = vld [vmem:[#allocation5 + $0x1d4] ss:$8 sps:$4 sm:$0xff]  }
 0x1da   :  { %1233 = vmatprep.subr.bf16.mxu1 %v1862_v46  ;;  %v1899_v46 = vld [vmem:[#allocation5 + $0x1d0] ss:$8 sps:$4 sm:$0xff]  }
 0x26f   :  { %v740_v4 = vpop.f32.mrb[0].mxu1  ;;  %v2209_v5 = vpop.f32.mrb[4].mxu0 }
 0x270   :  { %v741_v6 = vadd.f32 %v740_v4, %v369_v1  ;;  %v742_v7 = vpop.f32.mrb[1].mxu1  ;;  %v783_v8 = vpop.f32.mrb[5].mxu0  ;;  %v782_v50 = vadd.f32 %v2209_v5, %v377_v47 }
 0x271   :  { %v743_v9 = vadd.f32 %v742_v7, %v373_v2  ;;  %v784_v10 = vadd.f32 %v783_v8, %v381_v3  ;;  %v744_v11 = vpop.f32.mrb[2].mxu1  ;;  %v785_v12 = vpop.f32.mrb[6].mxu0 }
 0x272   :  { %v788_v13 = vmax.f32 %v741_v6, 0.0  ;;  %v745_v14 = vpop.f32.mrb[3].mxu1  ;;  %v786_v15 = vpop.f32.mrb[7].mxu0  ;;  %v790_v53 = vmax.f32 %v782_v50, 0.0  ;;  %v1627_v12 = vld [vmem:[%s2251_s10] ss:$0 sm:$0xff] }
 0x273   :  { %v789_v16 = vmax.f32 %v743_v9, 0.0  ;;  %v791_v17 = vmax.f32 %v784_v10, 0.0 }
 0x274   :  { %v857_v20 = vpack.c.bf16 %v788_v13, %v788_v13  ;;  %v859_v56 = vpack.c.bf16 %v790_v53, %v790_v53 }
 0x275   :  { %v858_v18 = vpack.c.bf16 %v789_v16, %v789_v16  ;;  %v860_v0 = vpack.c.bf16 %v791_v17, %v791_v17  ;;  %v1644_v16 = vld [vmem:[%s2252_s11] ss:$0 sm:$0xff] }
 0x277   :  { %1224 = vmatprep.mubr.bf16.mxu1 %v858_v18 }
 0x278   :  { %1225 = vmatmul.mubr.bf16.vlgmr.msra.gmra.mrb[4].mxu1 %v857_v20  ;;  %v1645_v20 = vld [vmem:[#allocation2] ss:$0 sm:$0xff] }
 0x279   :  { %1234 = vmatpush1.bf16.msra.mxu1 %v1860_v19  ;;  %1265 = vmatprep.mubr.bf16.mxu1 %v860_v0 }
 0x27a   :  { %1235 = vmatprep.subr.bf16.mxu1 %v1865_v21 }
 0x27d   :  { %1236 = vmatpush1.bf16.msra.mxu1 %v1863_v22 }
 0x27e   :  { %1237 = vmatprep.subr.bf16.mxu1 %v1868_v23 }
 0x281   :  { %1238 = vmatpush1.bf16.msra.mxu1 %v1866_v24 }
 0x282   :  { %1239 = vmatprep.subr.bf16.mxu1 %v1871_v25 }
 0x285   :  { %1240 = vmatpush1.bf16.msra.mxu1 %v1869_v26 }
 0x286   :  { %1241 = vmatprep.subr.bf16.mxu1 %v1874_v27 }
 0x289   :  { %1242 = vmatpush1.bf16.msra.mxu1 %v1872_v28 }
 0x28a   :  { %1243 = vmatprep.subr.bf16.mxu1 %v1877_v29 }
 0x28d   :  { %1244 = vmatpush1.bf16.msra.mxu1 %v1875_v30 }
 0x28e   :  { %1245 = vmatprep.subr.bf16.mxu1 %v1880_v31 }
 0x291   :  { %1246 = vmatpush1.bf16.msra.mxu1 %v1878_v32 }
 0x292   :  { %1247 = vmatprep.subr.bf16.mxu1 %v1883_v33 }
 0x295   :  { %1248 = vmatpush1.bf16.msra.mxu1 %v1881_v34 }
 0x296   :  { %1249 = vmatprep.subr.bf16.mxu1 %v1886_v35 }
 0x299   :  { %1250 = vmatpush1.bf16.msra.mxu1 %v1884_v36 }
 0x29a   :  { %1251 = vmatprep.subr.bf16.mxu1 %v1889_v37 }
 0x29d   :  { %1252 = vmatpush1.bf16.msra.mxu1 %v1887_v38 }
 0x29e   :  { %1253 = vmatprep.subr.bf16.mxu1 %v1892_v39 }
 0x2a1   :  { %1254 = vmatpush1.bf16.msra.mxu1 %v1890_v40 }
 0x2a2   :  { %1255 = vmatprep.subr.bf16.mxu1 %v1895_v41 }
 0x2a5   :  { %1256 = vmatpush1.bf16.msra.mxu1 %v1893_v42 }
 0x2a6   :  { %1257 = vmatprep.subr.bf16.mxu1 %v1898_v43 }
 0x2a9   :  { %1258 = vmatpush1.bf16.msra.mxu1 %v1896_v44 }
 0x2aa   :  { %1259 = vmatprep.subr.bf16.mxu1 %v1901_v45 }
 0x2ad   :  { %1260 = vmatpush1.bf16.msra.mxu1 %v1899_v46 }
 0x2ae   :  { %1261 = vmatprep.subr.bf16.mxu1 %v1904_v48 }
 0x2b1   :  { %1262 = vmatpush1.bf16.msra.mxu1 %v1902_v49 }
 0x2b2   :  { %1263 = vmatprep.subr.bf16.mxu1 %v1907_v51 }
 0x2b5   :  { %1264 = vmatpush1.bf16.msra.mxu1 %v1905_v52 }
 0x2b8   :  { %1266 = vmatmul.mubr.bf16.vlgmr.msra.gmra.mrb[4].mxu1 %v859_v56 }
 0x38b   :  { %v1267_v1 = vpop.f32.mrb[4].mxu1 }
 0x38c   :  { %v1668_v2 = vadd.f32 %v1267_v1, %v865_v62  ;;  %v1269_v3 = vpop.f32.mrb[5].mxu1 }
 0x38d   :  { %v1669_v4 = vadd.f32 %v1269_v3, %v869_v63  ;;  %v1271_v5 = vpop.f32.mrb[6].mxu1 }
 0x38e   :  { %v1274_v6 = vmax.f32 %v1668_v2, 0.0  ;;  %v1272_v7 = vpop.f32.mrb[7].mxu1 }
 0x38f   :  { %v1275_v8 = vmax.f32 %v1669_v4, 0.0 }
 0x390   :  { %v1309_v10 = vpack.c.bf16 %v1274_v6, %v1274_v6 }
 0x391   :  { %v1310_v9 = vpack.c.bf16 %v1275_v8, %v1275_v8 }
 0x393   :  { %1445 = vmatprep.mubr.bf16.mxu0 %v1310_v9 }
 0x394   :  { %1446 = vmatmul.mubr.bf16.vlgmr.msra.gmra.mrb[8].mxu0 %v1309_v10 }
 0x467   :  { %v1662_v11 = vpop.f32.mrb[8].mxu0 }
 0x468   :  { %v1663_v55 = vpop.f32.mrb[9].mxu0 }
 0x469   :  { %v1664_v13 = vadd.f32 %v1663_v55, %v1662_v11  ;;  %v1665_v58 = vpop.f32.mrb[10].mxu0 }
 0x46a   :  { %v1666_v14 = vpop.f32.mrb[11].mxu0 }
 0x46b   :  { %v1448_v15 = vadd.f32 %v1664_v13, %v1627_v12 }
 0x46d   :  { %v1453_v17 = vmax.f32 %v1448_v15, 0.0 }
 0x46f   :  { %v1462_v18 = vmul.f32 %v1644_v16, %v1453_v17 }
 0x471   :  { %v1464_v19 = vsel %vm1463_vm0, %v1462_v18, 0.0 }
 0x472   :  { %1465 = vadd.xlane.f32.xlu1 %v1464_v19 }
 0x4ff   :  { %v1466_v21 = vpop.xlane.xlu1 %1465 }
 0x500   :  { %v1473_v0 = vadd.f32 %v1645_v20, %v1466_v21 }
 0x502   :  { %1475 = vst.msk [vmem:[%s2254_s13] sm:$0xff] %vm1474_vm1, %v1473_v0 }
 0x503   :  { %1480 = vsyncpa [#allocation4], 1 }
 0x504   :  { %1481 = vsyncpa [#allocation6], 1 }

</bundles_post_ra>
